<compile_context>
chip_gen: v6e
topology: v6e:2x2x1
jax: 0.10.0
libtpu: 0.0.40
codegen_flags: <defaults>
</compile_context>

<pallas_src>
import functools

import jax
import jax.numpy as jnp
from jax.experimental import pallas as pl
from jax.experimental.pallas import tpu as pltpu


def _round_up(x, m):
    return ((x + m - 1) // m) * m


def _normal_latent_kernel(x_ref, w1_ref, b1_ref, w2m_ref, w2s_ref,
                          b2m_ref, b2s_ref, noise_ref,
                          mean_ref, std_ref, lat_ref):
    # First linear + ReLU (MXU matmul, f32 accumulate).
    x = x_ref[...]
    h = jnp.dot(x, w1_ref[...], preferred_element_type=jnp.float32) + b1_ref[...]
    h = jnp.maximum(h, 0.0)

    # Second linear, split into mean / std heads (no mid-vreg lane slicing).
    mean = jnp.dot(h, w2m_ref[...], preferred_element_type=jnp.float32) + b2m_ref[...]
    std_raw = jnp.dot(h, w2s_ref[...], preferred_element_type=jnp.float32) + b2s_ref[...]

    # softplus(x) = log(1 + exp(x)) computed stably, + 1e-5 floor.
    std = jnp.logaddexp(std_raw, 0.0) + 1e-05

    mean_ref[...] = mean.astype(mean_ref.dtype)
    std_ref[...] = std.astype(std_ref.dtype)
    lat_ref[...] = (mean + noise_ref[...] * std).astype(lat_ref.dtype)


@functools.partial(jax.jit, static_argnames=("n_latents",))
def normal_latent_dist(x, w1, b1, w2, b2, noise, *, n_latents):
    """x: (B, T, in_dim) -> (mean, std, latents), each (B, T, n_latents)."""
    B, T, in_dim = x.shape
    M = B * T
    hidden = w1.shape[1]

    # --- lane-dense padding of the internal / output feature dims ----------
    H_pad = _round_up(hidden, 128)
    N_pad = _round_up(n_latents, 128)

    # --- row tiling over M --------------------------------------------------
    TM_TARGET = 512
    TM = _round_up(M, 8) if M <= TM_TARGET else TM_TARGET
    M_pad = _round_up(M, TM)
    grid = (M_pad // TM,)

    # --- prepare operands (zero padding; padded lanes contribute nothing) ---
    x2 = x.reshape(M, in_dim)
    noise2 = noise.reshape(M, n_latents)
    if M_pad != M:
        x2 = jnp.pad(x2, ((0, M_pad - M), (0, 0)))
        noise2 = jnp.pad(noise2, ((0, M_pad - M), (0, 0)))
    noise2 = jnp.pad(noise2, ((0, 0), (0, N_pad - n_latents)))

    w1_p = jnp.pad(w1, ((0, 0), (0, H_pad - hidden)))
    b1_p = jnp.pad(b1.reshape(1, hidden), ((0, 0), (0, H_pad - hidden)))

    w2_mean = jnp.pad(w2[:, :n_latents],
                      ((0, H_pad - hidden), (0, N_pad - n_latents)))
    w2_std = jnp.pad(w2[:, n_latents:],
                     ((0, H_pad - hidden), (0, N_pad - n_latents)))
    b2_mean = jnp.pad(b2[:n_latents].reshape(1, n_latents),
                      ((0, 0), (0, N_pad - n_latents)))
    b2_std = jnp.pad(b2[n_latents:].reshape(1, n_latents),
                     ((0, 0), (0, N_pad - n_latents)))

    out_sds = (
        jax.ShapeDtypeStruct((M_pad, N_pad), jnp.float32),  # mean
        jax.ShapeDtypeStruct((M_pad, N_pad), jnp.float32),  # std
        jax.ShapeDtypeStruct((M_pad, N_pad), jnp.float32),  # latents
    )

    # Streaming tiles over the row axis; weights resident (constant index_map).
    row_spec = lambda cols: pl.BlockSpec((TM, cols), lambda i: (i, 0))
    resident = lambda shape: pl.BlockSpec(shape, lambda i: (0, 0))

    mean_f, std_f, lat_f = pl.pallas_call(
        _normal_latent_kernel,
        out_shape=out_sds,
        grid=grid,
        in_specs=[
            row_spec(in_dim),              # x tile
            resident((in_dim, H_pad)),     # w1
            resident((1, H_pad)),          # b1
            resident((H_pad, N_pad)),      # w2_mean
            resident((H_pad, N_pad)),      # w2_std
            resident((1, N_pad)),          # b2_mean
            resident((1, N_pad)),          # b2_std
            row_spec(N_pad),               # noise tile
        ],
        out_specs=[
            row_spec(N_pad),               # mean
            row_spec(N_pad),               # std
            row_spec(N_pad),               # latents
        ],
        compiler_params=pltpu.CompilerParams(
            dimension_semantics=("parallel",)),
    )(x2, w1_p, b1_p, w2_mean, w2_std, b2_mean, b2_std, noise2)

    mean = mean_f[:M, :n_latents].reshape(B, T, n_latents)
    std = std_f[:M, :n_latents].reshape(B, T, n_latents)
    latents = lat_f[:M, :n_latents].reshape(B, T, n_latents)
    return mean, std, latents


if __name__ == "__main__":
    # Small shapes consistent with the module: x is (batch, seq, in_dim).
    B, T = 2, 8
    in_dim, hidden, n_latents = 32, 32, 16

    key = jax.random.PRNGKey(0)
    kx, kn, kw1, kb1, kw2, kb2 = jax.random.split(key, 6)

    x = jax.random.normal(kx, (B, T, in_dim), dtype=jnp.float32)
    noise = jax.random.normal(kn, (B, T, n_latents), dtype=jnp.float32)

    # Deterministic parameter init (PyTorch-Linear-style uniform +-1/sqrt(fan_in)).
    lim1 = 1.0 / jnp.sqrt(in_dim)
    lim2 = 1.0 / jnp.sqrt(hidden)
    w1 = jax.random.uniform(kw1, (in_dim, hidden), jnp.float32, -lim1, lim1)
    b1 = jax.random.uniform(kb1, (hidden,), jnp.float32, -lim1, lim1)
    w2 = jax.random.uniform(kw2, (hidden, 2 * n_latents), jnp.float32, -lim2, lim2)
    b2 = jax.random.uniform(kb2, (2 * n_latents,), jnp.float32, -lim2, lim2)

    mean, std, latents = normal_latent_dist(
        x, w1, b1, w2, b2, noise, n_latents=n_latents)
    jax.block_until_ready((mean, std, latents))

    # Pure-JAX reference check.
    h_ref = jnp.maximum(x.reshape(-1, in_dim) @ w1 + b1, 0.0)
    out_ref = h_ref @ w2 + b2
    mean_ref = out_ref[:, :n_latents].reshape(B, T, n_latents)
    std_ref = (jax.nn.softplus(out_ref[:, n_latents:]) + 1e-05).reshape(B, T, n_latents)
    lat_ref = mean_ref + noise * std_ref
    assert jnp.allclose(mean, mean_ref, atol=1e-5)
    assert jnp.allclose(std, std_ref, atol=1e-5)
    assert jnp.allclose(latents, lat_ref, atol=1e-5)

    print("KERNEL_OK")
</pallas_src>

<mosaic_0001>
module attributes {stable_mosaic.version = 11 : i64} {
  func.func @_normal_latent_kernel(%arg0: i32, %arg1: memref<16x32xf32, #tpu.memory_space<vmem>>, %arg2: memref<32x128xf32, #tpu.memory_space<vmem>>, %arg3: memref<1x128xf32, #tpu.memory_space<vmem>>, %arg4: memref<128x128xf32, #tpu.memory_space<vmem>>, %arg5: memref<128x128xf32, #tpu.memory_space<vmem>>, %arg6: memref<1x128xf32, #tpu.memory_space<vmem>>, %arg7: memref<1x128xf32, #tpu.memory_space<vmem>>, %arg8: memref<16x128xf32, #tpu.memory_space<vmem>>, %arg9: memref<16x128xf32, #tpu.memory_space<vmem>>, %arg10: memref<16x128xf32, #tpu.memory_space<vmem>>, %arg11: memref<16x128xf32, #tpu.memory_space<vmem>>) attributes {dimension_semantics = [#tpu.dimension_semantics<parallel>], iteration_bounds = array<i64: 1>, scalar_prefetch = 0 : i64, scratch_operands = 0 : i64, tpu.core_type = #tpu.core_type<tc>, window_params = [{transform_indices = @transform_0, window_bounds = array<i64: 16, 32>}, {pipeline_mode = #tpu.pipeline_mode<synchronous>, transform_indices = @transform_1, window_bounds = array<i64: 32, 128>}, {pipeline_mode = #tpu.pipeline_mode<synchronous>, transform_indices = @transform_2, window_bounds = array<i64: 1, 128>}, {pipeline_mode = #tpu.pipeline_mode<synchronous>, transform_indices = @transform_3, window_bounds = array<i64: 128, 128>}, {pipeline_mode = #tpu.pipeline_mode<synchronous>, transform_indices = @transform_4, window_bounds = array<i64: 128, 128>}, {pipeline_mode = #tpu.pipeline_mode<synchronous>, transform_indices = @transform_5, window_bounds = array<i64: 1, 128>}, {pipeline_mode = #tpu.pipeline_mode<synchronous>, transform_indices = @transform_6, window_bounds = array<i64: 1, 128>}, {transform_indices = @transform_7, window_bounds = array<i64: 16, 128>}, {transform_indices = @transform_8, window_bounds = array<i64: 16, 128>}, {transform_indices = @transform_9, window_bounds = array<i64: 16, 128>}, {transform_indices = @transform_10, window_bounds = array<i64: 16, 128>}]} {
    %c0 = arith.constant 0 : index
    %c0_0 = arith.constant 0 : index
    %0 = vector.load %arg1[%c0, %c0_0] : memref<16x32xf32, #tpu.memory_space<vmem>>, vector<16x32xf32>
    %c0_1 = arith.constant 0 : index
    %c0_2 = arith.constant 0 : index
    %1 = vector.load %arg2[%c0_1, %c0_2] : memref<32x128xf32, #tpu.memory_space<vmem>>, vector<32x128xf32>
    %cst = arith.constant dense<0.000000e+00> : vector<16x128xf32>
    %2 = tpu.matmul %0, %1, %cst {dimension_numbers = #tpu.dot_dimension_numbers<[1], [0], [0], [1], [0, 0, 1, 1], [], []>} : vector<16x32xf32>, vector<32x128xf32>, vector<16x128xf32> -> vector<16x128xf32>
    %c0_3 = arith.constant 0 : index
    %c0_4 = arith.constant 0 : index
    %3 = vector.load %arg3[%c0_3, %c0_4] : memref<1x128xf32, #tpu.memory_space<vmem>>, vector<1x128xf32>
    %4 = vector.broadcast %3 : vector<1x128xf32> to vector<16x128xf32>
    %5 = arith.addf %2, %4 : vector<16x128xf32>
    %cst_5 = arith.constant 0.000000e+00 : f32
    %6 = vector.broadcast %cst_5 : f32 to vector<16x128xf32>
    %7 = arith.maximumf %5, %6 : vector<16x128xf32>
    %c0_6 = arith.constant 0 : index
    %c0_7 = arith.constant 0 : index
    %8 = vector.load %arg4[%c0_6, %c0_7] : memref<128x128xf32, #tpu.memory_space<vmem>>, vector<128x128xf32>
    %cst_8 = arith.constant dense<0.000000e+00> : vector<16x128xf32>
    %9 = tpu.matmul %7, %8, %cst_8 {dimension_numbers = #tpu.dot_dimension_numbers<[1], [0], [0], [1], [0, 0, 1, 1], [], []>} : vector<16x128xf32>, vector<128x128xf32>, vector<16x128xf32> -> vector<16x128xf32>
    %c0_9 = arith.constant 0 : index
    %c0_10 = arith.constant 0 : index
    %10 = vector.load %arg6[%c0_9, %c0_10] : memref<1x128xf32, #tpu.memory_space<vmem>>, vector<1x128xf32>
    %11 = vector.broadcast %10 : vector<1x128xf32> to vector<16x128xf32>
    %12 = arith.addf %9, %11 : vector<16x128xf32>
    %c0_11 = arith.constant 0 : index
    %c0_12 = arith.constant 0 : index
    %13 = vector.load %arg5[%c0_11, %c0_12] : memref<128x128xf32, #tpu.memory_space<vmem>>, vector<128x128xf32>
    %cst_13 = arith.constant dense<0.000000e+00> : vector<16x128xf32>
    %14 = tpu.matmul %7, %13, %cst_13 {dimension_numbers = #tpu.dot_dimension_numbers<[1], [0], [0], [1], [0, 0, 1, 1], [], []>} : vector<16x128xf32>, vector<128x128xf32>, vector<16x128xf32> -> vector<16x128xf32>
    %c0_14 = arith.constant 0 : index
    %c0_15 = arith.constant 0 : index
    %15 = vector.load %arg7[%c0_14, %c0_15] : memref<1x128xf32, #tpu.memory_space<vmem>>, vector<1x128xf32>
    %16 = vector.broadcast %15 : vector<1x128xf32> to vector<16x128xf32>
    %17 = arith.addf %14, %16 : vector<16x128xf32>
    %cst_16 = arith.constant 0.000000e+00 : f32
    %18 = vector.broadcast %cst_16 : f32 to vector<16x128xf32>
    %19 = arith.maximumf %17, %18 : vector<16x128xf32>
    %20 = vector.broadcast %cst_16 : f32 to vector<16x128xf32>
    %21 = arith.subf %17, %20 : vector<16x128xf32>
    %22 = arith.cmpf one, %21, %21 : vector<16x128xf32>
    %23 = vector.broadcast %cst_16 : f32 to vector<16x128xf32>
    %24 = arith.addf %17, %23 : vector<16x128xf32>
    %25 = math.absf %21 : vector<16x128xf32>
    %cst_17 = arith.constant 0.000000e+00 : f32
    %26 = vector.broadcast %cst_17 : f32 to vector<16x128xf32>
    %27 = arith.subf %26, %25 : vector<16x128xf32>
    %28 = math.exp %27 : vector<16x128xf32>
    %29 = math.log1p %28 : vector<16x128xf32>
    %30 = arith.addf %19, %29 : vector<16x128xf32>
    %31 = arith.select %22, %24, %30 : vector<16x128xi1>, vector<16x128xf32>
    %cst_18 = arith.constant 9.99999974E-6 : f32
    %32 = vector.broadcast %cst_18 : f32 to vector<16x128xf32>
    %33 = arith.addf %31, %32 : vector<16x128xf32>
    %c0_19 = arith.constant 0 : index
    %c0_20 = arith.constant 0 : index
    %34 = vector.load %arg9[%c0_19, %c0_20] : memref<16x128xf32, #tpu.memory_space<vmem>>, vector<16x128xf32>
    tpu.vector_store %arg9[%c0_19, %c0_20], %12 {strides = array<i32>} : memref<16x128xf32, #tpu.memory_space<vmem>>, vector<16x128xf32>,
    %c0_21 = arith.constant 0 : index
    %c0_22 = arith.constant 0 : index
    %35 = vector.load %arg10[%c0_21, %c0_22] : memref<16x128xf32, #tpu.memory_space<vmem>>, vector<16x128xf32>
    tpu.vector_store %arg10[%c0_21, %c0_22], %33 {strides = array<i32>} : memref<16x128xf32, #tpu.memory_space<vmem>>, vector<16x128xf32>,
    %c0_23 = arith.constant 0 : index
    %c0_24 = arith.constant 0 : index
    %36 = vector.load %arg8[%c0_23, %c0_24] : memref<16x128xf32, #tpu.memory_space<vmem>>, vector<16x128xf32>
    %37 = arith.mulf %36, %33 : vector<16x128xf32>
    %38 = arith.addf %12, %37 : vector<16x128xf32>
    %c0_25 = arith.constant 0 : index
    %c0_26 = arith.constant 0 : index
    %39 = vector.load %arg11[%c0_25, %c0_26] : memref<16x128xf32, #tpu.memory_space<vmem>>, vector<16x128xf32>
    tpu.vector_store %arg11[%c0_25, %c0_26], %38 {strides = array<i32>} : memref<16x128xf32, #tpu.memory_space<vmem>>, vector<16x128xf32>,
    return
  }
  func.func @transform_0(%arg0: i32) -> (i32, i32) {
    %c0_i32 = arith.constant 0 : i32
    %c0_i32_0 = arith.constant 0 : i32
    return %arg0, %c0_i32 : i32, i32
  }
  func.func @transform_1(%arg0: i32) -> (i32, i32) {
    %c0_i32 = arith.constant 0 : i32
    %c0_i32_0 = arith.constant 0 : i32
    %c0_i32_1 = arith.constant 0 : i32
    return %c0_i32, %c0_i32_0 : i32, i32
  }
  func.func @transform_2(%arg0: i32) -> (i32, i32) {
    %c0_i32 = arith.constant 0 : i32
    %c0_i32_0 = arith.constant 0 : i32
    %c0_i32_1 = arith.constant 0 : i32
    return %c0_i32, %c0_i32_0 : i32, i32
  }
  func.func @transform_3(%arg0: i32) -> (i32, i32) {
    %c0_i32 = arith.constant 0 : i32
    %c0_i32_0 = arith.constant 0 : i32
    %c0_i32_1 = arith.constant 0 : i32
    return %c0_i32, %c0_i32_0 : i32, i32
  }
  func.func @transform_4(%arg0: i32) -> (i32, i32) {
    %c0_i32 = arith.constant 0 : i32
    %c0_i32_0 = arith.constant 0 : i32
    %c0_i32_1 = arith.constant 0 : i32
    return %c0_i32, %c0_i32_0 : i32, i32
  }
  func.func @transform_5(%arg0: i32) -> (i32, i32) {
    %c0_i32 = arith.constant 0 : i32
    %c0_i32_0 = arith.constant 0 : i32
    %c0_i32_1 = arith.constant 0 : i32
    return %c0_i32, %c0_i32_0 : i32, i32
  }
  func.func @transform_6(%arg0: i32) -> (i32, i32) {
    %c0_i32 = arith.constant 0 : i32
    %c0_i32_0 = arith.constant 0 : i32
    %c0_i32_1 = arith.constant 0 : i32
    return %c0_i32, %c0_i32_0 : i32, i32
  }
  func.func @transform_7(%arg0: i32) -> (i32, i32) {
    %c0_i32 = arith.constant 0 : i32
    %c0_i32_0 = arith.constant 0 : i32
    return %arg0, %c0_i32 : i32, i32
  }
  func.func @transform_8(%arg0: i32) -> (i32, i32) {
    %c0_i32 = arith.constant 0 : i32
    %c0_i32_0 = arith.constant 0 : i32
    return %arg0, %c0_i32 : i32, i32
  }
  func.func @transform_9(%arg0: i32) -> (i32, i32) {
    %c0_i32 = arith.constant 0 : i32
    %c0_i32_0 = arith.constant 0 : i32
    return %arg0, %c0_i32 : i32, i32
  }
  func.func @transform_10(%arg0: i32) -> (i32, i32) {
    %c0_i32 = arith.constant 0 : i32
    %c0_i32_0 = arith.constant 0 : i32
    return %arg0, %c0_i32 : i32, i32
  }
}

</mosaic_0001>

<bundles_post_ra>
// kernel: normal_latent_dist.1
= control target key start
LH: loop header
LB: loop body
LE: loop exit
PB: predicated region body
PF: predicated region fallthrough
CT: control target
= control target key end

     0   :  { %vm45_vm0 = vcmask 261120   ;;  %s727_s1 = inlined_call_operand.vmem [shape: f32[32,128], index: 1, kind: input, shape index: {}]   ;;  %s728_s0 = inlined_call_operand.vmem [shape: f32[16,32], index: 0, kind: input, shape index: {}]   ;;  %s729_s3 = inlined_call_operand.vmem [shape: f32[128,128], index: 3, kind: input, shape index: {}]   ;;  %s730_s4 = inlined_call_operand.vmem [shape: f32[128,128], index: 4, kind: input, shape index: {}]   ;;  %s731_s2 = inlined_call_operand.vmem [shape: f32[1,128], index: 2, kind: input, shape index: {}]   ;;  %s732_s5 = inlined_call_operand.vmem [shape: f32[1,128], index: 5, kind: input, shape index: {}]   ;;  %s733_s6 = inlined_call_operand.vmem [shape: f32[1,128], index: 6, kind: input, shape index: {}]   ;;  %s734_s8 = inlined_call_operand.vmem [shape: f32[16,128], index: 8, kind: output, shape index: {0}]   ;;  %s735_s7 = inlined_call_operand.vmem [shape: f32[16,128], index: 7, kind: input, shape index: {}]   ;;  %s736_s9 = inlined_call_operand.vmem [shape: f32[16,128], index: 9, kind: output, shape index: {1}]   ;;  %s737_s10 = inlined_call_operand.vmem [shape: f32[16,128], index: 10, kind: output, shape index: {2}]  }
   0x1   :  { %v37_v0 = vld [vmem:[%s727_s1 + $0x18] sm:$0xff]  ;;  %v36_v1 = vld [vmem:[%s727_s1 + $0x10] sm:$0xff]  ;;  %v32_v2 = vld [vmem:[%s728_s0] sm:$0xff] }
   0x2   :  { %434 = vmatprep.subr.mxu0 %v37_v0  ;;  %v35_v3 = vld [vmem:[%s727_s1 + $0x8] sm:$0xff]  ;;  %442 = vmatprep.mubr.msk.f32.mxu0 %vm45_vm0, %v32_v2  ;;  %v144_v4 = vld [vmem:[%s729_s3 + $0x78] sm:$0xff]  ;;  %v143_v5 = vld [vmem:[%s729_s3 + $0x70] sm:$0xff] }
   0x3   :  { %435 = vmatpush3.msra.mxu0 %v37_v0  ;;  %445 = vmatprep.subr.mxu1 %v144_v4  ;;  %v34_v6 = vld [vmem:[%s727_s1] sm:$0xff]  ;;  %v142_v7 = vld [vmem:[%s729_s3 + $0x68] sm:$0xff]  ;;  %v242_v9 = vld [vmem:[%s730_s4 + $0x78] sm:$0xff] }
   0x4   :  { %436 = vmatprep.subr.mxu0 %v36_v1  ;;  %446 = vmatpush3.msra.mxu1 %v144_v4  ;;  %v33_v8 = vld [vmem:[%s728_s0 + $0x8] sm:$0xff]  ;;  %v141_v10 = vld [vmem:[%s729_s3 + $0x60] sm:$0xff]  ;;  %v241_v11 = vld [vmem:[%s730_s4 + $0x70] sm:$0xff] }
   0x5   :  { %437 = vmatpush3.msra.mxu0 %v36_v1  ;;  %447 = vmatprep.subr.mxu1 %v143_v5  ;;  %v140_v12 = vld [vmem:[%s729_s3 + $0x58] sm:$0xff]  ;;  %v240_v13 = vld [vmem:[%s730_s4 + $0x68] sm:$0xff]  ;;  %v139_v14 = vld [vmem:[%s729_s3 + $0x50] sm:$0xff] }
   0x6   :  { %438 = vmatprep.subr.mxu0 %v35_v3  ;;  %448 = vmatpush3.msra.mxu1 %v143_v5  ;;  %v239_v15 = vld [vmem:[%s730_s4 + $0x60] sm:$0xff]  ;;  %v138_v16 = vld [vmem:[%s729_s3 + $0x48] sm:$0xff]  ;;  %v238_v17 = vld [vmem:[%s730_s4 + $0x58] sm:$0xff] }
   0x7   :  { %439 = vmatpush3.msra.mxu0 %v35_v3  ;;  %449 = vmatprep.subr.mxu1 %v142_v7  ;;  %v137_v18 = vld [vmem:[%s729_s3 + $0x40] sm:$0xff]  ;;  %v237_v19 = vld [vmem:[%s730_s4 + $0x50] sm:$0xff]  ;;  %v136_v20 = vld [vmem:[%s729_s3 + $0x38] sm:$0xff] }
   0x8   :  { %440 = vmatprep.subr.mxu0 %v34_v6  ;;  %450 = vmatpush3.msra.mxu1 %v142_v7  ;;  %v236_v21 = vld [vmem:[%s730_s4 + $0x48] sm:$0xff]  ;;  %v135_v22 = vld [vmem:[%s729_s3 + $0x30] sm:$0xff]  ;;  %v235_v23 = vld [vmem:[%s730_s4 + $0x40] sm:$0xff] }
   0x9   :  { %441 = vmatpush3.msra.mxu0 %v34_v6  ;;  %451 = vmatprep.subr.mxu1 %v141_v10  ;;  %v134_v24 = vld [vmem:[%s729_s3 + $0x28] sm:$0xff]  ;;  %v234_v25 = vld [vmem:[%s730_s4 + $0x38] sm:$0xff]  ;;  %v133_v26 = vld [vmem:[%s729_s3 + $0x20] sm:$0xff] }
   0xa   :  { %443 = vmatmul.mubr.msk.f32.vlgmr.msra.gmra.mxu0 %vm45_vm0, %v33_v8  ;;  %480 = vmatprep.subr.mxu0 %v242_v9  ;;  %v233_v27 = vld [vmem:[%s730_s4 + $0x30] sm:$0xff]  ;;  %v232_v28 = vld [vmem:[%s730_s4 + $0x28] sm:$0xff]  ;;  %v231_v29 = vld [vmem:[%s730_s4 + $0x20] sm:$0xff] }
   0xb   :  { %481 = vmatpush3.msra.mxu0 %v242_v9  ;;  %452 = vmatpush3.msra.mxu1 %v141_v10  ;;  %v132_v30 = vld [vmem:[%s729_s3 + $0x18] sm:$0xff]  ;;  %v131_v32 = vld [vmem:[%s729_s3 + $0x10] sm:$0xff]  ;;  %v130_v34 = vld [vmem:[%s729_s3 + $0x8] sm:$0xff] }
   0xc   :  { %482 = vmatprep.subr.mxu0 %v241_v11  ;;  %453 = vmatprep.subr.mxu1 %v140_v12  ;;  %v230_v31 = vld [vmem:[%s730_s4 + $0x18] sm:$0xff]  ;;  %v229_v33 = vld [vmem:[%s730_s4 + $0x10] sm:$0xff]  ;;  %v228_v35 = vld [vmem:[%s730_s4 + $0x8] sm:$0xff] }
   0xd   :  { %483 = vmatpush3.msra.mxu0 %v241_v11  ;;  %454 = vmatpush3.msra.mxu1 %v140_v12  ;;  %v129_v36 = vld [vmem:[%s729_s3] sm:$0xff] }
   0xe   :  { %484 = vmatprep.subr.mxu0 %v240_v13  ;;  %455 = vmatprep.subr.mxu1 %v139_v14  ;;  %v227_v37 = vld [vmem:[%s730_s4] sm:$0xff] }
   0xf   :  { %485 = vmatpush3.msra.mxu0 %v240_v13  ;;  %456 = vmatpush3.msra.mxu1 %v139_v14  ;;  %v387_v38 = vld [vmem:[%s731_s2] ss:$0 sm:$0xff] }
  0x10   :  { %486 = vmatprep.subr.mxu0 %v239_v15  ;;  %457 = vmatprep.subr.mxu1 %v138_v16  ;;  %v390_v45 = vld [vmem:[%s732_s5] ss:$0 sm:$0xff] }
  0x11   :  { %487 = vmatpush3.msra.mxu0 %v239_v15  ;;  %458 = vmatpush3.msra.mxu1 %v138_v16  ;;  %v391_v46 = vld [vmem:[%s733_s6] ss:$0 sm:$0xff] }
  0x12   :  { %488 = vmatprep.subr.mxu0 %v238_v17  ;;  %459 = vmatprep.subr.mxu1 %v137_v18 }
  0x13   :  { %489 = vmatpush3.msra.mxu0 %v238_v17  ;;  %460 = vmatpush3.msra.mxu1 %v137_v18  ;;  %v368_v18 = vld [vmem:[%s735_s7 + $0x8] sm:$0xff] }
  0x14   :  { %490 = vmatprep.subr.mxu0 %v237_v19  ;;  %461 = vmatprep.subr.mxu1 %v136_v20 }
  0x15   :  { %491 = vmatpush3.msra.mxu0 %v237_v19  ;;  %462 = vmatpush3.msra.mxu1 %v136_v20 }
  0x16   :  { %492 = vmatprep.subr.mxu0 %v236_v21  ;;  %463 = vmatprep.subr.mxu1 %v135_v22 }
  0x17   :  { %493 = vmatpush3.msra.mxu0 %v236_v21  ;;  %464 = vmatpush3.msra.mxu1 %v135_v22 }
  0x18   :  { %494 = vmatprep.subr.mxu0 %v235_v23  ;;  %465 = vmatprep.subr.mxu1 %v134_v24 }
  0x19   :  { %495 = vmatpush3.msra.mxu0 %v235_v23  ;;  %466 = vmatpush3.msra.mxu1 %v134_v24  ;;  %v367_v24 = vld [vmem:[%s735_s7] sm:$0xff] }
  0x1a   :  { %496 = vmatprep.subr.mxu0 %v234_v25  ;;  %467 = vmatprep.subr.mxu1 %v133_v26 }
  0x1b   :  { %497 = vmatpush3.msra.mxu0 %v234_v25  ;;  %468 = vmatpush3.msra.mxu1 %v133_v26 }
  0x1c   :  { %498 = vmatprep.subr.mxu0 %v233_v27  ;;  %469 = vmatprep.subr.mxu1 %v132_v30 }
  0x1d   :  { %499 = vmatpush3.msra.mxu0 %v233_v27  ;;  %470 = vmatpush3.msra.mxu1 %v132_v30 }
  0x1e   :  { %500 = vmatprep.subr.mxu0 %v232_v28  ;;  %471 = vmatprep.subr.mxu1 %v131_v32 }
  0x1f   :  { %501 = vmatpush3.msra.mxu0 %v232_v28  ;;  %472 = vmatpush3.msra.mxu1 %v131_v32 }
  0x20   :  { %502 = vmatprep.subr.mxu0 %v231_v29  ;;  %473 = vmatprep.subr.mxu1 %v130_v34 }
  0x21   :  { %503 = vmatpush3.msra.mxu0 %v231_v29  ;;  %474 = vmatpush3.msra.mxu1 %v130_v34 }
  0x22   :  { %504 = vmatprep.subr.mxu0 %v230_v31  ;;  %475 = vmatprep.subr.mxu1 %v129_v36 }
  0x23   :  { %505 = vmatpush3.msra.mxu0 %v230_v31  ;;  %476 = vmatpush3.msra.mxu1 %v129_v36 }
  0x24   :  { %506 = vmatprep.subr.mxu0 %v229_v33 }
  0x25   :  { %507 = vmatpush3.msra.mxu0 %v229_v33 }
  0x26   :  { %508 = vmatprep.subr.mxu0 %v228_v35 }
  0x27   :  { %509 = vmatpush3.msra.mxu0 %v228_v35 }
  0x28   :  { %510 = vmatprep.subr.mxu0 %v227_v37 }
  0x29   :  { %511 = vmatpush3.msra.mxu0 %v227_v37 }
  0xca   :  { %v444_v39 = vpop.f32.mrf.mxu0 }
  0xcb   :  { %v124_v40 = vadd.f32 %v444_v39, %v387_v38 }
  0xcc   :  { %v118_v41 = vpop.f32.mrf.mxu0 }
  0xcd   :  { %v119_v42 = vadd.f32 %v387_v38, %v118_v41  ;;  %v128_v44 = vmax.f32 %v124_v40, 0.0 }
  0xcf   :  { %v127_v43 = vmax.f32 %v119_v42, 0.0 }
  0xd1   :  { %477 = vmatprep.mubr.f32.mxu1 %v127_v43  ;;  %512 = vmatprep.mubr.f32.mxu0 %v127_v43 }
  0xd2   :  { %478 = vmatmul.mubr.f32.vlgmr.msra.gmra.mxu1 %v128_v44  ;;  %513 = vmatmul.mubr.f32.vlgmr.msra.gmra.mxu0 %v128_v44 }
 0x192   :  { %v479_v47 = vpop.f32.mrf.mxu1  ;;  %v514_v48 = vpop.f32.mrf.mxu0 }
 0x193   :  { %v224_v49 = vadd.f32 %v479_v47, %v390_v45  ;;  %v322_v50 = vadd.f32 %v514_v48, %v391_v46 }
 0x194   :  { %v218_v51 = vpop.f32.mrf.mxu1  ;;  %v316_v52 = vpop.f32.mrf.mxu0 }
 0x195   :  { %364 = vst [vmem:[%s734_s8 + $0x8] sm:$0xff] %v224_v49  ;;  %v332_v53 = vand.u32 2147483647, %v322_v50  ;;  %v219_v54 = vadd.f32 %v390_v45, %v218_v51  ;;  %v317_v55 = vadd.f32 %v391_v46, %v316_v52  ;;  %v326_v10 = vmax.f32 %v322_v50, 0.0 }
 0x196   :  { %vm328_vm2 = vcmp.ne.f32.partialorder %v322_v50, %v322_v50 }
 0x197   :  { %v334_v56 = vsub.f32 0.0, %v332_v53  ;;  %363 = vst [vmem:[%s734_s8] sm:$0xff] %v219_v54  ;;  %v331_v57 = vand.u32 2147483647, %v317_v55  ;;  %v325_v16 = vmax.f32 %v317_v55, 0.0  ;;  %vm327_vm4 = vcmp.ne.f32.partialorder %v317_v55, %v317_v55 }
 0x199   :  { %v337_v58 = vmul.f32 1.442695, %v334_v56  ;;  %v333_v59 = vsub.f32 0.0, %v331_v57 }
 0x19b   :  { %515 = vpow2.f32 %v337_v58  ;;  %v335_v60 = vmul.f32 1.442695, %v333_v59 }
 0x19d   :  { %517 = vpow2.f32 %v335_v60 }
 0x1a8   :  { %v516_v61 = vpop.eup %515 }
 0x1a9   :  { %v348_v62 = vadd.f32 1.0, %v516_v61  ;;  %v351_v1 = vmul.f32 -0.5, %v516_v61  ;;  %v354_v4 = vand.u32 2147483647, %v516_v61 }
 0x1aa   :  { %v518_v63 = vpop.eup %517 }
 0x1ab   :  { %519 = vlog2.f32 %v348_v62  ;;  %v339_v0 = vadd.f32 1.0, %v518_v63  ;;  %v342_v2 = vmul.f32 -0.5, %v518_v63  ;;  %v352_v3 = vadd.f32 1.0, %v351_v1 }
 0x1ac   :  { %v345_v9 = vand.u32 2147483647, %v518_v63  ;;  %vm355_vm1 = vcmp.lt.f32.partialorder %v354_v4, 0.0004427343 }
 0x1ad   :  { %521 = vlog2.f32 %v339_v0  ;;  %v343_v6 = vadd.f32 1.0, %v342_v2  ;;  %v353_v8 = vmul.f32 %v516_v61, %v352_v3 }
 0x1ae   :  { %vm346_vm3 = vcmp.lt.f32.partialorder %v345_v9, 0.0004427343 }
 0x1af   :  { %v344_v15 = vmul.f32 %v518_v63, %v343_v6 }
 0x1b8   :  { %v520_v5 = vpop.eup %519 }
 0x1b9   :  { %v350_v7 = vmul.f32 0.6931472, %v520_v5 }
 0x1ba   :  { %v522_v11 = vpop.eup %521 }
 0x1bb   :  { %v356_v12 = vsel %vm355_vm1, %v353_v8, %v350_v7  ;;  %v341_v14 = vmul.f32 0.6931472, %v522_v11 }
 0x1bc   :  { %v358_v13 = vadd.f32 %v356_v12, %v326_v10 }
 0x1bd   :  { %v347_v19 = vsel %vm346_vm3, %v344_v15, %v341_v14 }
 0x1be   :  { %v360_v17 = vsel %vm328_vm2, %v322_v50, %v358_v13  ;;  %v357_v21 = vadd.f32 %v347_v19, %v325_v16 }
 0x1bf   :  { %v362_v20 = vadd.f32 1e-05, %v360_v17 }
 0x1c0   :  { %v359_v23 = vsel %vm327_vm4, %v317_v55, %v357_v21 }
 0x1c1   :  { %366 = vst [vmem:[%s736_s9 + $0x8] sm:$0xff] %v362_v20  ;;  %v370_v22 = vmul.f32 %v368_v18, %v362_v20  ;;  %v361_v25 = vadd.f32 1e-05, %v359_v23 }
 0x1c3   :  { %v372_v26 = vadd.f32 %v370_v22, %v224_v49  ;;  %365 = vst [vmem:[%s736_s9] sm:$0xff] %v361_v25  ;;  %v369_v27 = vmul.f32 %v367_v24, %v361_v25 }
 0x1c5   :  { %374 = vst [vmem:[%s737_s10 + $0x8] sm:$0xff] %v372_v26  ;;  %v371_v28 = vadd.f32 %v369_v27, %v219_v54 }
 0x1c7   :  { %373 = vst [vmem:[%s737_s10] sm:$0xff] %v371_v28 }

</bundles_post_ra>
